<compile_context>
chip_gen: v7x
topology: tpu7x:2x2x1
jax: 0.10.0
libtpu: 0.0.40
codegen_flags: <defaults>
</compile_context>

<pallas_src>
import functools

import jax
import jax.numpy as jnp
from jax import lax
from jax.experimental import pallas as pl
from jax.experimental.pallas import tpu as pltpu


def _round_up(x, m):
    return (x + m - 1) // m * m


# ----------------------------------------------------------------------------
# Pallas kernel: fused dual-head MLP
#   h       = relu(x @ [W1 | W3] + [b1 | b3])        (single MXU pass, f32 acc)
#   z_r     = sum(h[:, :Hh] * w2_row)  + b2          (VPU mul + XLU lane reduce)
#   z_c     = sum(h[:, Hh:] * w4_row)  + b4
#   out     = [tanh(z_r) | sigmoid(z_c)]             (one [tm, 2] store)
# ----------------------------------------------------------------------------
def _prm_heads_kernel(x_ref, wa_ref, ba_ref, wb_ref, bd_ref, out_ref, *, hh):
    # x:  [tm, H]  bf16          wa: [H, K2] bf16      ba: [1, K2] f32
    # wb: [1, K2]  f32 ([w2|w4]) bd: [1, 2]  f32       out:[tm, 2] f32
    h = jnp.dot(x_ref[...], wa_ref[...], preferred_element_type=jnp.float32)
    h = jnp.maximum(h + ba_ref[...], 0.0)            # shared ReLU (both heads)
    # Dropout(0.1) of step_reward_head: no-op in eval/inference mode.

    hw = h * wb_ref[...]                              # VPU (stays f32)
    z_r = jnp.sum(hw[:, :hh], axis=-1, keepdims=True)   # XLU lane reduce
    z_c = jnp.sum(hw[:, hh:], axis=-1, keepdims=True)
    z = jnp.concatenate([z_r, z_c], axis=-1) + bd_ref[...]

    col = lax.broadcasted_iota(jnp.int32, z.shape, 1)
    out = jnp.where(col == 0, jnp.tanh(z), jax.nn.sigmoid(z))
    out_ref[...] = out.astype(out_ref.dtype)


def _physical_vmem_bytes():
    try:
        return int(pltpu.get_tpu_info().vmem_capacity_bytes)
    except Exception:
        return 64 << 20                               # conservative (v7x per-TC)


def _vmem_limit_bytes(tm, H, K2, x_buffers):
    # Buffered(1) weights (single copy) + x tiles + f32 intermediates + out.
    weights = H * K2 * 2 + K2 * 4 + K2 * 4 + 2 * 4
    x_tiles = x_buffers * tm * H * 2                  # bf16 x
    interm = 2 * tm * K2 * 4                          # f32 h, hw
    out_tiles = 2 * tm * 2 * 4
    est = int((weights + x_tiles + interm + out_tiles) * 1.25) + (4 << 20)
    phys = _physical_vmem_bytes()
    return max(32 << 20, min(est, phys - (8 << 20)))


def prm_heads(hidden_flat, packed_params, *, tm=512, x_buffers=2):
    """hidden_flat: [M, H] bf16.  Returns (rewards [M,1], confidences [M,1]) f32."""
    M, H = hidden_flat.shape
    wa, ba, wb, bd, hh = packed_params
    K2 = wa.shape[1]                                  # Hh + Hq

    # Clamp the row tile to the problem size (keep multiple of 8 sublanes);
    # no jnp.pad -- Pallas handles the ragged last block, OOB rows are masked
    # on writeback and never reach the output.
    tm = _round_up(min(tm, _round_up(M, 8)), 8)
    grid = (pl.cdiv(M, tm),)

    # Constant-index weight/bias blocks: single-buffered, DMA'd once.
    def resident(shape):
        return pl.BlockSpec(shape, lambda i: (0,) * len(shape),
                            pipeline_mode=pl.Buffered(1))

    out = pl.pallas_call(
        functools.partial(_prm_heads_kernel, hh=hh),
        out_shape=jax.ShapeDtypeStruct((M, 2), jnp.float32),
        grid_spec=pltpu.PrefetchScalarGridSpec(
            num_scalar_prefetch=0,
            grid=grid,
            in_specs=[
                pl.BlockSpec((tm, H), lambda i: (i, 0),
                             pipeline_mode=pl.Buffered(x_buffers)),  # x row tile (bf16)
                resident((H, K2)),                    # Wa = [W1 | W3]   (bf16)
                resident((1, K2)),                    # ba = [b1 | b3]   (f32)
                resident((1, K2)),                    # wb = [w2 | w4]   (f32)
                resident((1, 2)),                     # bd = [b2 | b4]   (f32)
            ],
            out_specs=pl.BlockSpec((tm, 2), lambda i: (i, 0)),
        ),
        compiler_params=pltpu.CompilerParams(
            dimension_semantics=("parallel",),        # shard row grid across TCs
            vmem_limit_bytes=_vmem_limit_bytes(tm, H, K2, x_buffers),
        ),
    )(hidden_flat, wa, ba, wb, bd)

    return out[:, 0:1], out[:, 1:2]


# ----------------------------------------------------------------------------
# Parameter packing (done once, outside the kernel call path)
# ----------------------------------------------------------------------------
def pack_head_params(params):
    """(w1,b1,w2,b2,w3,b3,w4,b4) f32 -> (Wa bf16, ba f32, wb f32, bd f32, Hh)."""
    w1, b1, w2, b2, w3, b3, w4, b4 = params
    Hh = w1.shape[1]

    wa = jnp.concatenate([w1, w3], axis=1).astype(jnp.bfloat16)       # [H, Hh+Hq]
    ba = jnp.concatenate([b1, b3], axis=1).astype(jnp.float32)        # [1, Hh+Hq]
    wb = jnp.concatenate([w2[:, 0], w4[:, 0]])[None, :].astype(jnp.float32)  # [1, Hh+Hq]
    bd = jnp.concatenate([b2, b4], axis=1).astype(jnp.float32)        # [1, 2]
    return wa, ba, wb, bd, Hh


# ----------------------------------------------------------------------------
# ProcessRewardModel forward (JAX wrapper)
# ----------------------------------------------------------------------------
def process_reward_model_forward(input_ids, embed_table, packed_head_params, *, tm=512):
    """Mirrors ProcessRewardModel.forward with step_positions=None (all positions)."""
    B, S = input_ids.shape
    H = embed_table.shape[1]

    # Synthetic base_model: bf16 embedding gather -> last_hidden_state [B, S, H].
    # Emitting bf16 directly halves the kernel's dominant HBM stream with no
    # extra activation cast pass.
    # TODO(synk): optionally fuse this gather into the heads kernel
    #             (PrefetchScalarGridSpec + row-gather DMA) to kill the
    #             hidden_states re-read entirely.
    hidden_states = embed_table.astype(jnp.bfloat16)[input_ids]       # [B, S, H] bf16

    hidden_flat = hidden_states.reshape(B * S, H)
    rewards_flat, confs_flat = prm_heads(hidden_flat, packed_head_params, tm=tm)

    return {
        "step_rewards": rewards_flat.reshape(B, S, 1),
        "step_confidences": confs_flat.reshape(B, S, 1),
        "hidden_states": hidden_states,
    }


# ----------------------------------------------------------------------------
# Deterministic parameter init (nn.Linear-style uniform ranges)
# ----------------------------------------------------------------------------
def init_params(key, hidden_size):
    H = hidden_size
    Hh, Hq = H // 2, H // 4
    ks = jax.random.split(key, 8)

    def lin(kw, kb, fan_in, fan_out):
        bound = 1.0 / jnp.sqrt(fan_in)
        w = jax.random.uniform(kw, (fan_in, fan_out), jnp.float32, -bound, bound)
        b = jax.random.uniform(kb, (1, fan_out), jnp.float32, -bound, bound)
        return w, b

    w1, b1 = lin(ks[0], ks[1], H, Hh)
    w2, b2 = lin(ks[2], ks[3], Hh, 1)
    w3, b3 = lin(ks[4], ks[5], H, Hq)
    w4, b4 = lin(ks[6], ks[7], Hq, 1)
    return (w1, b1, w2, b2, w3, b3, w4, b4)


if __name__ == "__main__":
    key = jax.random.PRNGKey(0)
    k_emb, k_ids, k_par = jax.random.split(key, 3)

    B, S, H, VOCAB = 2, 8, 32, 64   # small shapes consistent with the module

    embed_table = jax.random.normal(k_emb, (VOCAB, H), jnp.float32) * 0.02
    input_ids = jax.random.randint(k_ids, (B, S), 0, VOCAB, jnp.int32)
    head_params = init_params(k_par, H)
    packed = pack_head_params(head_params)

    out = process_reward_model_forward(input_ids, embed_table, packed)
    jax.block_until_ready(out)

    # Reference: original module math in f32, applied to the same bf16 hidden
    # states the heads kernel consumes (heads parity), with tolerance relaxed
    # for bf16 matmul inputs / bf16 hidden states (f32 accumulation).
    hs_bf = embed_table.astype(jnp.bfloat16)[input_ids]
    hs = hs_bf.astype(jnp.float32).reshape(B * S, H)
    w1, b1, w2, b2, w3, b3, w4, b4 = head_params
    ref_r = jnp.tanh(jnp.maximum(hs @ w1 + b1, 0.0) @ w2 + b2).reshape(B, S, 1)
    ref_c = jax.nn.sigmoid(jnp.maximum(hs @ w3 + b3, 0.0) @ w4 + b4).reshape(B, S, 1)

    assert out["step_rewards"].shape == (B, S, 1)
    assert out["step_confidences"].shape == (B, S, 1)
    assert out["hidden_states"].shape == (B, S, H)
    assert jnp.allclose(out["step_rewards"], ref_r, atol=3e-2)
    assert jnp.allclose(out["step_confidences"], ref_c, atol=3e-2)

    print("KERNEL_OK")
</pallas_src>

<mosaic_0001>
module attributes {stable_mosaic.version = 11 : i64} {
  func.func @_prm_heads_kernel(%arg0: i32, %arg1: memref<16x32xbf16, #tpu.memory_space<vmem>>, %arg2: memref<32x24xbf16, #tpu.memory_space<vmem>>, %arg3: memref<1x24xf32, #tpu.memory_space<vmem>>, %arg4: memref<1x24xf32, #tpu.memory_space<vmem>>, %arg5: memref<1x2xf32, #tpu.memory_space<vmem>>, %arg6: memref<16x2xf32, #tpu.memory_space<vmem>>) attributes {dimension_semantics = [#tpu.dimension_semantics<parallel>], iteration_bounds = array<i64: 1>, scalar_prefetch = 0 : i64, scratch_operands = 0 : i64, tpu.core_type = #tpu.core_type<tc>, window_params = [{pipeline_mode = #tpu.pipeline_mode<double_buffered>, transform_indices = @transform_0, window_bounds = array<i64: 16, 32>}, {pipeline_mode = #tpu.pipeline_mode<synchronous>, transform_indices = @transform_1, window_bounds = array<i64: 32, 24>}, {pipeline_mode = #tpu.pipeline_mode<synchronous>, transform_indices = @transform_2, window_bounds = array<i64: 1, 24>}, {pipeline_mode = #tpu.pipeline_mode<synchronous>, transform_indices = @transform_3, window_bounds = array<i64: 1, 24>}, {pipeline_mode = #tpu.pipeline_mode<synchronous>, transform_indices = @transform_4, window_bounds = array<i64: 1, 2>}, {transform_indices = @transform_5, window_bounds = array<i64: 16, 2>}]} {
    %c0 = arith.constant 0 : index
    %c0_0 = arith.constant 0 : index
    %0 = vector.load %arg1[%c0, %c0_0] : memref<16x32xbf16, #tpu.memory_space<vmem>>, vector<16x32xbf16>
    %c0_1 = arith.constant 0 : index
    %c0_2 = arith.constant 0 : index
    %1 = vector.load %arg2[%c0_1, %c0_2] : memref<32x24xbf16, #tpu.memory_space<vmem>>, vector<32x24xbf16>
    %cst = arith.constant dense<0.000000e+00> : vector<16x24xf32>
    %2 = tpu.matmul %0, %1, %cst {dimension_numbers = #tpu.dot_dimension_numbers<[1], [0], [0], [1], [0, 0, 1, 1], [], []>} : vector<16x32xbf16>, vector<32x24xbf16>, vector<16x24xf32> -> vector<16x24xf32>
    %c0_3 = arith.constant 0 : index
    %c0_4 = arith.constant 0 : index
    %3 = vector.load %arg3[%c0_3, %c0_4] : memref<1x24xf32, #tpu.memory_space<vmem>>, vector<1x24xf32>
    %4 = vector.broadcast %3 : vector<1x24xf32> to vector<16x24xf32>
    %5 = arith.addf %2, %4 : vector<16x24xf32>
    %cst_5 = arith.constant 0.000000e+00 : f32
    %6 = vector.broadcast %cst_5 : f32 to vector<16x24xf32>
    %7 = arith.maximumf %5, %6 : vector<16x24xf32>
    %c0_6 = arith.constant 0 : index
    %c0_7 = arith.constant 0 : index
    %8 = vector.load %arg4[%c0_6, %c0_7] : memref<1x24xf32, #tpu.memory_space<vmem>>, vector<1x24xf32>
    %9 = vector.broadcast %8 : vector<1x24xf32> to vector<16x24xf32>
    %10 = arith.mulf %7, %9 : vector<16x24xf32>
    %11 = vector.extract_strided_slice %10 {offsets = [0, 0], sizes = [16, 16], strides = [1, 1]} : vector<16x24xf32> to vector<16x16xf32>
    %cst_8 = arith.constant dense<0.000000e+00> : vector<16xf32>
    %12 = vector.multi_reduction <add>, %11, %cst_8 [1] : vector<16x16xf32> to vector<16xf32>
    %13 = vector.shape_cast %12 : vector<16xf32> to vector<16x1xf32>
    %14 = vector.extract_strided_slice %10 {offsets = [0, 16], sizes = [16, 8], strides = [1, 1]} : vector<16x24xf32> to vector<16x8xf32>
    %cst_9 = arith.constant dense<0.000000e+00> : vector<16xf32>
    %15 = vector.multi_reduction <add>, %14, %cst_9 [1] : vector<16x8xf32> to vector<16xf32>
    %16 = vector.shape_cast %15 : vector<16xf32> to vector<16x1xf32>
    %17 = tpu.concatenate %13, %16 in 1 : vector<16x1xf32>, vector<16x1xf32> -> vector<16x2xf32>
    %c0_10 = arith.constant 0 : index
    %c0_11 = arith.constant 0 : index
    %18 = vector.load %arg5[%c0_10, %c0_11] : memref<1x2xf32, #tpu.memory_space<vmem>>, vector<1x2xf32>
    %19 = vector.broadcast %18 : vector<1x2xf32> to vector<16x2xf32>
    %20 = arith.addf %17, %19 : vector<16x2xf32>
    %21 = tpu.iota {dimensions = array<i32: 1>} : vector<16x2xi32>
    %c0_i32 = arith.constant 0 : i32
    %22 = vector.broadcast %c0_i32 : i32 to vector<16x2xi32>
    %23 = arith.cmpi eq, %21, %22 : vector<16x2xi32>
    %24 = math.tanh %20 : vector<16x2xf32>
    %25 = arith.negf %20 : vector<16x2xf32>
    %26 = math.exp %25 : vector<16x2xf32>
    %cst_12 = arith.constant 1.000000e+00 : f32
    %27 = vector.broadcast %cst_12 : f32 to vector<16x2xf32>
    %28 = arith.addf %27, %26 : vector<16x2xf32>
    %29 = arith.divf %27, %28 : vector<16x2xf32>
    %30 = arith.select %23, %24, %29 : vector<16x2xi1>, vector<16x2xf32>
    %c0_13 = arith.constant 0 : index
    %c0_14 = arith.constant 0 : index
    %31 = vector.load %arg6[%c0_13, %c0_14] : memref<16x2xf32, #tpu.memory_space<vmem>>, vector<16x2xf32>
    tpu.vector_store %arg6[%c0_13, %c0_14], %30 {strides = array<i32>} : memref<16x2xf32, #tpu.memory_space<vmem>>, vector<16x2xf32>,
    return
  }
  func.func @transform_0(%arg0: i32) -> (i32, i32) {
    %c0_i32 = arith.constant 0 : i32
    %c0_i32_0 = arith.constant 0 : i32
    return %arg0, %c0_i32 : i32, i32
  }
  func.func @transform_1(%arg0: i32) -> (i32, i32) {
    %c0_i32 = arith.constant 0 : i32
    %c0_i32_0 = arith.constant 0 : i32
    %c0_i32_1 = arith.constant 0 : i32
    return %c0_i32, %c0_i32_0 : i32, i32
  }
  func.func @transform_2(%arg0: i32) -> (i32, i32) {
    %c0_i32 = arith.constant 0 : i32
    %c0_i32_0 = arith.constant 0 : i32
    %c0_i32_1 = arith.constant 0 : i32
    return %c0_i32, %c0_i32_0 : i32, i32
  }
  func.func @transform_3(%arg0: i32) -> (i32, i32) {
    %c0_i32 = arith.constant 0 : i32
    %c0_i32_0 = arith.constant 0 : i32
    %c0_i32_1 = arith.constant 0 : i32
    return %c0_i32, %c0_i32_0 : i32, i32
  }
  func.func @transform_4(%arg0: i32) -> (i32, i32) {
    %c0_i32 = arith.constant 0 : i32
    %c0_i32_0 = arith.constant 0 : i32
    %c0_i32_1 = arith.constant 0 : i32
    return %c0_i32, %c0_i32_0 : i32, i32
  }
  func.func @transform_5(%arg0: i32) -> (i32, i32) {
    %c0_i32 = arith.constant 0 : i32
    %c0_i32_0 = arith.constant 0 : i32
    return %arg0, %c0_i32 : i32, i32
  }
}

</mosaic_0001>

<bundles_post_ra>
// kernel: tpu_custom_call.1
= control target key start
LH: loop header
LB: loop body
LE: loop exit
PB: predicated region body
PF: predicated region fallthrough
CT: control target
= control target key end

     0   :  { %v205_v0 = vmov 0.0   ;;  %vm206_vm0 = vmmov 0   ;;  %vm51_vm1 = vcmask 261120   ;;  %vm107_vm2 = vcmask 130048   ;;  %s262_s1 = inlined_call_operand.vmem [shape: bf16[32,24], index: 1, kind: input, shape index: {}]   ;;  %s263_s0 = inlined_call_operand.vmem [shape: bf16[16,32], index: 0, kind: input, shape index: {}]   ;;  %s264_s2 = inlined_call_operand.vmem [shape: f32[1,24], index: 2, kind: input, shape index: {}]   ;;  %s265_s3 = inlined_call_operand.vmem [shape: f32[1,24], index: 3, kind: input, shape index: {}]   ;;  %s266_s4 = inlined_call_operand.vmem [shape: f32[1,2], index: 4, kind: input, shape index: {}]   ;;  %s267_s5 = inlined_call_operand.vmem [shape: f32[16,2], index: 5, kind: output, shape index: {}]  }
   0x1   :  { %179 = vmatprep.subr.bf16.mxu0 %v205_v0  ;;  %v190_v1 = vld [vmem:[%s262_s1] sm:$0xff]   ;;  %183 = vmatprep.mubr.msk.bf16.mxu0 %vm206_vm0, %v205_v0  ;;  %v191_v2 = vld [vmem:[%s262_s1 + $0x8] sm:$0xff]   ;;  %vm122_vm3 = vcmask 64512   ;;  %vm129_vm4 = vcmask 7168   ;;  %v141_v35 = vlaneseq  ;;  %vm160_vm6 = vcmask 15360  }
   0x2   :  { %180 = vmatpush3.bf16.msra.mxu0 %v190_v1  ;;  %v192_v3 = vld [vmem:[%s263_s0] sm:$0xff]   ;;  %s207_s0 = smov 112  }
   0x3   :  { %181 = vmatprep.subr.bf16.mxu0 %v205_v0  ;;  %v167_v4 = vld [vmem:[%s264_s2] ss:$0 sm:$0xff]  ;;  %v142_v38 = vand.u32 127, %v141_v35 }
   0x4   :  { %v172_v9 = vld [vmem:[%s265_s3] ss:$0 sm:$0xff] }
   0x5   :  { %v173_v23 = vld [vmem:[%s266_s4] ss:$0 sm:$0xff]  ;;  %vm143_vm5 = vcmp.eq.s32.totalorder %v142_v38, 0 }
   0x6   :  { %182 = vmatpush3.bf16.msra.mxu0 %v191_v2 }
   0x9   :  { %184 = vmatmul.mubr.msk.bf16.vlgmr.msra.gmra.mrb[0].mxu0 %vm51_vm1, %v192_v3 }
  0xdc   :  { %v89_v5 = vpop.f32.mrb[0].mxu0 }
  0xdd   :  { %v90_v6 = vadd.f32 %v167_v4, %v89_v5  ;;  %v185_v7 = vpop.f32.mrb[1].mxu0 }
  0xde   :  { %v92_v8 = vpop.f32.mrb[2].mxu0 }
  0xdf   :  { %v96_v10 = vmax.f32 %v90_v6, 0.0  ;;  %v93_v11 = vadd.f32 %v167_v4, %v92_v8  ;;  %v186_v12 = vpop.f32.mrb[3].mxu0 }
  0xe1   :  { %v97_v13 = vmax.f32 %v93_v11, 0.0  ;;  %v105_v14 = vmul.f32 %v172_v9, %v96_v10 }
  0xe3   :  { %116 = vrot.lane.b32.xlu0 %v105_v14, %s207_s0  ;;  %v106_v15 = vmul.f32 %v172_v9, %v97_v13  ;;  %v108_v16 = vsel %vm107_vm2, %v105_v14, 0.0 }
  0xe4   :  { %109 = vadd.xlane.f32.xlu1 %v108_v16 }
  0xe5   :  { %v111_v17 = vsel %vm107_vm2, %v106_v15, 0.0 }
  0xe7   :  { %118 = vrot.lane.b32.xlu0 %v106_v15, %s207_s0 }
  0xe8   :  { %112 = vadd.xlane.f32.xlu1 %v111_v17 }
 0x155   :  { %v117_v18 = vpop.permute.xlu0 %116 }
 0x156   :  { %v123_v19 = vsel %vm122_vm3, %v117_v18, 0.0 }
 0x157   :  { %124 = vadd.xlane.f32.xlu0 %v123_v19 }
 0x159   :  { %v119_v20 = vpop.permute.xlu0 %118 }
 0x15a   :  { %v126_v21 = vsel %vm122_vm3, %v119_v20, 0.0 }
 0x15b   :  { %127 = vadd.xlane.f32.xlu1 %v126_v21 }
 0x171   :  { %v110_v22 = vpop.xlane.xlu1 %109 }
 0x175   :  { %v113_v24 = vpop.xlane.xlu1 %112 }
 0x1e4   :  { %v125_v25 = vpop.xlane.xlu0 %124 }
 0x1e5   :  { %v130_v26 = vsel %vm129_vm4, %v110_v22, %v125_v25 }
 0x1e6   :  { %v139_v27 = vadd.f32 %v173_v23, %v130_v26 }
 0x1e8   :  { %v174_v28 = vmul.f32 -1.442695, %v139_v27  ;;  %v128_v29 = vpop.xlane.xlu1 %127 }
 0x1e9   :  { %v131_v30 = vsel %vm129_vm4, %v113_v24, %v128_v29 }
 0x1ea   :  { %193 = vpow2.f32 %v174_v28  ;;  %v140_v31 = vadd.f32 %v173_v23, %v131_v30 }
 0x1ec   :  { %v175_v32 = vmul.f32 -1.442695, %v140_v31 }
 0x1ee   :  { %195 = vpow2.f32 %v175_v32 }
 0x1ef   :  { %197 = vtanh.f32 %v139_v27 }
 0x1f4   :  { %v194_v33 = vpop.eup %193 }
 0x1f5   :  { %v152_v34 = vadd.f32 1.0, %v194_v33 }
 0x1f7   :  { %199 = vrcp.f32 %v152_v34 }
 0x1f8   :  { %v196_v36 = vpop.eup %195  ;;  %201 = vtanh.f32 %v140_v31 }
 0x1f9   :  { %v153_v37 = vadd.f32 1.0, %v196_v36  ;;  %v198_v39 = vpop.eup %197 }
 0x1fb   :  { %203 = vrcp.f32 %v153_v37 }
 0x201   :  { %v200_v40 = vpop.eup %199 }
 0x202   :  { %v158_v41 = vsel %vm143_vm5, %v198_v39, %v200_v40  ;;  %v202_v42 = vpop.eup %201 }
 0x203   :  { %161 = vst.msk [vmem:[%s267_s5] sm:$0xff] %vm160_vm6, %v158_v41 }
 0x205   :  { %v204_v43 = vpop.eup %203 }
 0x206   :  { %v159_v44 = vsel %vm143_vm5, %v202_v42, %v204_v43 }
 0x207   :  { %162 = vst.msk [vmem:[%s267_s5 + $0x8] sm:$0xff] %vm160_vm6, %v159_v44 }

</bundles_post_ra>
